<compile_context>
chip_gen: v7x
topology: tpu7x:2x2x1
jax: 0.10.0
libtpu: 0.0.40
codegen_flags: <defaults>
</compile_context>

<pallas_src>
import functools

import jax
import jax.numpy as jnp
from jax.experimental import pallas as pl
from jax.experimental.pallas import tpu as pltpu


NEG_BIAS = -1e30  # bias for padded class lanes -> exp() == 0 in the softmax sum


def _round_up(x, m):
    return ((x + m - 1) // m) * m


def _cdiv(a, b):
    return (a + b - 1) // b


def _device_kind():
    try:
        return jax.devices()[0].device_kind.lower()
    except Exception:
        return ""


def _is_v7x():
    k = _device_kind()
    return ("v7" in k) or ("7x" in k)


def _is_v5():
    return "v5" in _device_kind()


# ----------------------------------------------------------------------------
# Kernel
# ----------------------------------------------------------------------------
def dann_kernel(x_ref, w1_ref, b1_ref, w2_ref, b2_ref, w3_ref, b3_ref, o_ref,
                *, bf16_exp):
    # x / weights are bf16 (native MXU mode); accumulate in f32 on the MXU.
    x = x_ref[...]

    # layer_input + ReLU   (K is only 8-wide thanks to the slim padding)
    h1 = jnp.dot(x, w1_ref[...], preferred_element_type=jnp.float32) + b1_ref[...]
    h1 = jnp.maximum(h1, 0.0).astype(jnp.bfloat16)

    # layer_hidden + ReLU
    h2 = jnp.dot(h1, w2_ref[...], preferred_element_type=jnp.float32) + b2_ref[...]
    h2 = jnp.maximum(h2, 0.0).astype(jnp.bfloat16)

    # layer_hidden2
    logits = jnp.dot(h2, w3_ref[...], preferred_element_type=jnp.float32) + b3_ref[...]

    # log_softmax along dim=1 (class/lane axis), numerically stable.
    # Padded class lanes carry a -1e30 bias so they add ~0 to the sum.
    m = jnp.max(logits, axis=-1, keepdims=True)
    z = logits - m
    if bf16_exp:
        # bf16 EUP path (v6e/v7x): exp in bf16, reduce/log in f32.
        e = jnp.exp(z.astype(jnp.bfloat16)).astype(jnp.float32)
    else:
        e = jnp.exp(z)
    lse = jnp.log(jnp.sum(e, axis=-1, keepdims=True))
    o_ref[...] = (z - lse).astype(o_ref.dtype)  # bf16 store, lane-dense 128 wide


# ----------------------------------------------------------------------------
# One-time parameter preparation (pad + cast, outside the per-call path)
# ----------------------------------------------------------------------------
def prepare_params(params):
    """Pad dims (K->8, hidden/class->128) and cast matmul operands to bf16.

    params = (w1, b1, w2, b2, w3, b3), w_i stored as [in, out], b_i as [out]
    or [1, out]. Returns (padded_params, n_class)."""
    w1, b1, w2, b2, w3, b3 = params
    n_in, n_h1 = w1.shape
    n_h2 = w2.shape[1]
    n_cls = w3.shape[1]
    n_in_p = max(_round_up(n_in, 8), 8)      # slim K padding (NOT 128)
    n_h1_p = _round_up(n_h1, 128)
    n_h2_p = _round_up(n_h2, 128)
    n_cls_p = _round_up(n_cls, 128)

    def pad2(a, r, c, fill=0.0):
        return jnp.pad(
            a, ((0, r - a.shape[0]), (0, c - a.shape[1])), constant_values=fill
        )

    w1p = pad2(w1, n_in_p, n_h1_p).astype(jnp.bfloat16)
    w2p = pad2(w2, n_h1_p, n_h2_p).astype(jnp.bfloat16)
    w3p = pad2(w3, n_h2_p, n_cls_p).astype(jnp.bfloat16)
    b1p = pad2(jnp.reshape(b1, (1, -1)), 1, n_h1_p).astype(jnp.float32)
    b2p = pad2(jnp.reshape(b2, (1, -1)), 1, n_h2_p).astype(jnp.float32)
    b3p = pad2(jnp.reshape(b3, (1, -1)), 1, n_cls_p, fill=NEG_BIAS).astype(jnp.float32)
    return (w1p, b1p, w2p, b2p, w3p, b3p), int(n_cls)


# ----------------------------------------------------------------------------
# Batch-tile heuristic
# ----------------------------------------------------------------------------
def _choose_block_b(B):
    bp = max(_round_up(B, 8), 8)
    # Large evenly-dividing tiles, ceiling ~1024 rows.
    n_steps = max(1, _cdiv(bp, 1024))
    block_b = _round_up(_cdiv(bp, n_steps), 8)
    if _is_v7x():
        # v7x has 2 TensorCores: keep >=2 (ideally an even number of) steps.
        steps = _cdiv(bp, block_b)
        if steps == 1 and bp >= 16:
            block_b = _round_up(_cdiv(bp, 2), 8)
        else:
            steps = _cdiv(bp, block_b)
            if steps > 1 and steps % 2 == 1:
                block_b = _round_up(_cdiv(bp, steps + 1), 8)
    return int(block_b)


# ----------------------------------------------------------------------------
# Forward
# ----------------------------------------------------------------------------
@functools.partial(
    jax.jit, static_argnames=("n_class", "block_b", "bf16_exp", "out_f32")
)
def _dann_forward_impl(x, padded_params, n_class, block_b, bf16_exp, out_f32):
    w1p, b1p, w2p, b2p, w3p, b3p = padded_params
    B, n_in = x.shape
    n_in_p = w1p.shape[0]
    n_cls_p = w3p.shape[1]

    Bp = _round_up(B, block_b)
    xp = jnp.pad(x, ((0, Bp - B), (0, n_in_p - n_in))).astype(jnp.bfloat16)

    # Whole-array VMEM residency for the (small) weights/biases: single copy,
    # no per-step DMA / double-buffering.
    resident = pl.BlockSpec(memory_space=pltpu.MemorySpace.VMEM)

    out_p = pl.pallas_call(
        functools.partial(dann_kernel, bf16_exp=bf16_exp),
        out_shape=jax.ShapeDtypeStruct((Bp, n_cls_p), jnp.bfloat16),
        grid_spec=pltpu.PrefetchScalarGridSpec(
            num_scalar_prefetch=0,
            grid=(Bp // block_b,),
            in_specs=[
                pl.BlockSpec((block_b, n_in_p), lambda i: (i, 0)),  # x tile (K=8)
                resident,  # w1
                resident,  # b1
                resident,  # w2
                resident,  # b2
                resident,  # w3
                resident,  # b3
            ],
            out_specs=pl.BlockSpec((block_b, n_cls_p), lambda i: (i, 0)),
        ),
        compiler_params=pltpu.CompilerParams(
            dimension_semantics=("parallel",),
            vmem_limit_bytes=32 * 1024 * 1024,
        ),
    )(xp, w1p, b1p, w2p, b2p, w3p, b3p)

    out = out_p[:B, :n_class]
    return out.astype(jnp.float32) if out_f32 else out


def dann_forward(x, padded_params, n_class, block_b=None, out_f32=True):
    """DaNN forward: log_softmax(relu(relu(x@W1+b1)@W2+b2)@W3+b3, dim=1).

    `padded_params` must come from prepare_params(raw_params) (done once)."""
    if block_b is None:
        block_b = _choose_block_b(x.shape[0])
    bf16_exp = not _is_v5()  # v5e has no bf16 EUP path; keep the exp in f32 there
    return _dann_forward_impl(x, padded_params, n_class, block_b, bf16_exp, out_f32)


def init_linear(key, n_in, n_out):
    """PyTorch-style uniform init: U(-1/sqrt(fan_in), 1/sqrt(fan_in)); W stored [in, out]."""
    kw, kb = jax.random.split(key)
    bound = 1.0 / jnp.sqrt(jnp.float32(n_in))
    w = jax.random.uniform(kw, (n_in, n_out), jnp.float32, -bound, bound)
    b = jax.random.uniform(kb, (1, n_out), jnp.float32, -bound, bound)
    return w, b


if __name__ == "__main__":
    # Module defaults: n_input=3, n_hidden1=256, n_hidden2=256, n_class=88.
    n_input, n_hidden1, n_hidden2, n_class = 3, 256, 256, 88
    batch = 32

    key = jax.random.PRNGKey(0)
    kx, k1, k2, k3 = jax.random.split(key, 4)

    x = jax.random.normal(kx, (batch, n_input), jnp.float32)
    w1, b1 = init_linear(k1, n_input, n_hidden1)
    w2, b2 = init_linear(k2, n_hidden1, n_hidden2)
    w3, b3 = init_linear(k3, n_hidden2, n_class)
    params = (w1, b1, w2, b2, w3, b3)

    # Pad/cast the weights once (outside the per-call path), then run.
    padded_params, n_cls = prepare_params(params)
    y = dann_forward(x, padded_params, n_cls)
    jax.block_until_ready(y)
    assert y.shape == (batch, n_class)

    # Pure-JAX f32 reference; tolerance accommodates bf16 MXU operands and the
    # bf16 output store.
    h1 = jnp.maximum(x @ w1 + b1, 0.0)
    h2 = jnp.maximum(h1 @ w2 + b2, 0.0)
    y_ref = jax.nn.log_softmax(h2 @ w3 + b3, axis=1)
    err = float(jnp.max(jnp.abs(y - y_ref)))
    assert err < 5e-2, f"mismatch vs reference, max abs err = {err}"

    print("KERNEL_OK")
</pallas_src>

<mosaic_0001>
module attributes {stable_mosaic.version = 11 : i64} {
  func.func @dann_kernel(%arg0: i32, %arg1: memref<32x8xbf16, #tpu.memory_space<vmem>>, %arg2: memref<8x256xbf16, #tpu.memory_space<vmem>>, %arg3: memref<1x256xf32, #tpu.memory_space<vmem>>, %arg4: memref<256x256xbf16, #tpu.memory_space<vmem>>, %arg5: memref<1x256xf32, #tpu.memory_space<vmem>>, %arg6: memref<256x128xbf16, #tpu.memory_space<vmem>>, %arg7: memref<1x128xf32, #tpu.memory_space<vmem>>, %arg8: memref<32x128xbf16, #tpu.memory_space<vmem>>) attributes {dimension_semantics = [#tpu.dimension_semantics<parallel>], iteration_bounds = array<i64: 1>, scalar_prefetch = 0 : i64, scratch_operands = 0 : i64, tpu.core_type = #tpu.core_type<tc>, window_params = [{transform_indices = @transform_0, window_bounds = array<i64: 32, 8>}, {pipeline_mode = #tpu.pipeline_mode<synchronous>, transform_indices = @transform_1, window_bounds = array<i64: 8, 256>}, {pipeline_mode = #tpu.pipeline_mode<synchronous>, transform_indices = @transform_2, window_bounds = array<i64: 1, 256>}, {pipeline_mode = #tpu.pipeline_mode<synchronous>, transform_indices = @transform_3, window_bounds = array<i64: 256, 256>}, {pipeline_mode = #tpu.pipeline_mode<synchronous>, transform_indices = @transform_4, window_bounds = array<i64: 1, 256>}, {pipeline_mode = #tpu.pipeline_mode<synchronous>, transform_indices = @transform_5, window_bounds = array<i64: 256, 128>}, {pipeline_mode = #tpu.pipeline_mode<synchronous>, transform_indices = @transform_6, window_bounds = array<i64: 1, 128>}, {transform_indices = @transform_7, window_bounds = array<i64: 32, 128>}]} {
    %c0 = arith.constant 0 : index
    %c0_0 = arith.constant 0 : index
    %0 = vector.load %arg1[%c0, %c0_0] : memref<32x8xbf16, #tpu.memory_space<vmem>>, vector<32x8xbf16>
    %c0_1 = arith.constant 0 : index
    %c0_2 = arith.constant 0 : index
    %1 = vector.load %arg2[%c0_1, %c0_2] : memref<8x256xbf16, #tpu.memory_space<vmem>>, vector<8x256xbf16>
    %cst = arith.constant dense<0.000000e+00> : vector<32x256xf32>
    %2 = tpu.matmul %0, %1, %cst {dimension_numbers = #tpu.dot_dimension_numbers<[1], [0], [0], [1], [0, 0, 1, 1], [], []>} : vector<32x8xbf16>, vector<8x256xbf16>, vector<32x256xf32> -> vector<32x256xf32>
    %c0_3 = arith.constant 0 : index
    %c0_4 = arith.constant 0 : index
    %3 = vector.load %arg3[%c0_3, %c0_4] : memref<1x256xf32, #tpu.memory_space<vmem>>, vector<1x256xf32>
    %4 = vector.broadcast %3 : vector<1x256xf32> to vector<32x256xf32>
    %5 = arith.addf %2, %4 : vector<32x256xf32>
    %cst_5 = arith.constant 0.000000e+00 : f32
    %6 = vector.broadcast %cst_5 : f32 to vector<32x256xf32>
    %7 = arith.maximumf %5, %6 : vector<32x256xf32>
    %8 = arith.truncf %7 : vector<32x256xf32> to vector<32x256xbf16>
    %c0_6 = arith.constant 0 : index
    %c0_7 = arith.constant 0 : index
    %9 = vector.load %arg4[%c0_6, %c0_7] : memref<256x256xbf16, #tpu.memory_space<vmem>>, vector<256x256xbf16>
    %cst_8 = arith.constant dense<0.000000e+00> : vector<32x256xf32>
    %10 = tpu.matmul %8, %9, %cst_8 {dimension_numbers = #tpu.dot_dimension_numbers<[1], [0], [0], [1], [0, 0, 1, 1], [], []>} : vector<32x256xbf16>, vector<256x256xbf16>, vector<32x256xf32> -> vector<32x256xf32>
    %c0_9 = arith.constant 0 : index
    %c0_10 = arith.constant 0 : index
    %11 = vector.load %arg5[%c0_9, %c0_10] : memref<1x256xf32, #tpu.memory_space<vmem>>, vector<1x256xf32>
    %12 = vector.broadcast %11 : vector<1x256xf32> to vector<32x256xf32>
    %13 = arith.addf %10, %12 : vector<32x256xf32>
    %cst_11 = arith.constant 0.000000e+00 : f32
    %14 = vector.broadcast %cst_11 : f32 to vector<32x256xf32>
    %15 = arith.maximumf %13, %14 : vector<32x256xf32>
    %16 = arith.truncf %15 : vector<32x256xf32> to vector<32x256xbf16>
    %c0_12 = arith.constant 0 : index
    %c0_13 = arith.constant 0 : index
    %17 = vector.load %arg6[%c0_12, %c0_13] : memref<256x128xbf16, #tpu.memory_space<vmem>>, vector<256x128xbf16>
    %cst_14 = arith.constant dense<0.000000e+00> : vector<32x128xf32>
    %18 = tpu.matmul %16, %17, %cst_14 {dimension_numbers = #tpu.dot_dimension_numbers<[1], [0], [0], [1], [0, 0, 1, 1], [], []>} : vector<32x256xbf16>, vector<256x128xbf16>, vector<32x128xf32> -> vector<32x128xf32>
    %c0_15 = arith.constant 0 : index
    %c0_16 = arith.constant 0 : index
    %19 = vector.load %arg7[%c0_15, %c0_16] : memref<1x128xf32, #tpu.memory_space<vmem>>, vector<1x128xf32>
    %20 = vector.broadcast %19 : vector<1x128xf32> to vector<32x128xf32>
    %21 = arith.addf %18, %20 : vector<32x128xf32>
    %cst_17 = arith.constant dense<0xFF800000> : vector<32xf32>
    %22 = vector.multi_reduction <maximumf>, %21, %cst_17 [1] : vector<32x128xf32> to vector<32xf32>
    %23 = vector.shape_cast %22 : vector<32xf32> to vector<32x1xf32>
    %24 = vector.broadcast %23 : vector<32x1xf32> to vector<32x128xf32>
    %25 = arith.subf %21, %24 : vector<32x128xf32>
    %26 = arith.truncf %25 : vector<32x128xf32> to vector<32x128xbf16>
    %27 = math.exp %26 : vector<32x128xbf16>
    %28 = arith.extf %27 : vector<32x128xbf16> to vector<32x128xf32>
    %cst_18 = arith.constant dense<0.000000e+00> : vector<32xf32>
    %29 = vector.multi_reduction <add>, %28, %cst_18 [1] : vector<32x128xf32> to vector<32xf32>
    %30 = vector.shape_cast %29 : vector<32xf32> to vector<32x1xf32>
    %31 = math.log %30 : vector<32x1xf32>
    %32 = vector.broadcast %31 : vector<32x1xf32> to vector<32x128xf32>
    %33 = arith.subf %25, %32 : vector<32x128xf32>
    %34 = arith.truncf %33 : vector<32x128xf32> to vector<32x128xbf16>
    %c0_19 = arith.constant 0 : index
    %c0_20 = arith.constant 0 : index
    %35 = vector.load %arg8[%c0_19, %c0_20] : memref<32x128xbf16, #tpu.memory_space<vmem>>, vector<32x128xbf16>
    tpu.vector_store %arg8[%c0_19, %c0_20], %34 {strides = array<i32>} : memref<32x128xbf16, #tpu.memory_space<vmem>>, vector<32x128xbf16>,
    return
  }
  func.func @transform_0(%arg0: i32) -> (i32, i32) {
    %c0_i32 = arith.constant 0 : i32
    %c0_i32_0 = arith.constant 0 : i32
    return %arg0, %c0_i32 : i32, i32
  }
  func.func @transform_1(%arg0: i32) -> (i32, i32) {
    %c0_i32 = arith.constant 0 : i32
    %c0_i32_0 = arith.constant 0 : i32
    %c0_i32_1 = arith.constant 0 : i32
    return %c0_i32, %c0_i32_0 : i32, i32
  }
  func.func @transform_2(%arg0: i32) -> (i32, i32) {
    %c0_i32 = arith.constant 0 : i32
    %c0_i32_0 = arith.constant 0 : i32
    %c0_i32_1 = arith.constant 0 : i32
    return %c0_i32, %c0_i32_0 : i32, i32
  }
  func.func @transform_3(%arg0: i32) -> (i32, i32) {
    %c0_i32 = arith.constant 0 : i32
    %c0_i32_0 = arith.constant 0 : i32
    %c0_i32_1 = arith.constant 0 : i32
    return %c0_i32, %c0_i32_0 : i32, i32
  }
  func.func @transform_4(%arg0: i32) -> (i32, i32) {
    %c0_i32 = arith.constant 0 : i32
    %c0_i32_0 = arith.constant 0 : i32
    %c0_i32_1 = arith.constant 0 : i32
    return %c0_i32, %c0_i32_0 : i32, i32
  }
  func.func @transform_5(%arg0: i32) -> (i32, i32) {
    %c0_i32 = arith.constant 0 : i32
    %c0_i32_0 = arith.constant 0 : i32
    %c0_i32_1 = arith.constant 0 : i32
    return %c0_i32, %c0_i32_0 : i32, i32
  }
  func.func @transform_6(%arg0: i32) -> (i32, i32) {
    %c0_i32 = arith.constant 0 : i32
    %c0_i32_0 = arith.constant 0 : i32
    %c0_i32_1 = arith.constant 0 : i32
    return %c0_i32, %c0_i32_0 : i32, i32
  }
  func.func @transform_7(%arg0: i32) -> (i32, i32) {
    %c0_i32 = arith.constant 0 : i32
    %c0_i32_0 = arith.constant 0 : i32
    return %arg0, %c0_i32 : i32, i32
  }
}

</mosaic_0001>

<bundles_post_ra>
// kernel: _dann_forward_impl.1
= control target key start
LH: loop header
LB: loop body
LE: loop exit
PB: predicated region body
PF: predicated region fallthrough
CT: control target
= control target key end

     0   :  { %12 = vsyncpa [#allocation3], 0  ;;  %s1024_s0 = inlined_call_operand.vmem [shape: bf16[32,8], index: 0, kind: input, shape index: {}]   ;;  %s1025_s1 = inlined_call_operand.vmem [shape: bf16[8,256], index: 1, kind: input, shape index: {}]   ;;  %s1026_s2 = inlined_call_operand.vmem [shape: f32[1,256], index: 2, kind: input, shape index: {}]   ;;  %s1027_s3 = inlined_call_operand.hbm [shape: bf16[256,256], index: 3, kind: input, shape index: {}]   ;;  %s1028_s4 = inlined_call_operand.vmem [shape: f32[1,256], index: 4, kind: input, shape index: {}]   ;;  %s1029_s5 = inlined_call_operand.hbm [shape: bf16[256,128], index: 5, kind: input, shape index: {}]   ;;  %s1030_s6 = inlined_call_operand.vmem [shape: f32[1,128], index: 6, kind: input, shape index: {}]   ;;  %s1031_s7 = inlined_call_operand.vmem [shape: bf16[32,128], index: 7, kind: output, shape index: {}]  }
   0x1   :  { %13 = vsyncpa [#allocation5], 0  ;;  %s927_s24 = smov [#allocation2]   ;;  %s879_s28 = scalar_lea.hbm %s1027_s3, 4096 }
   0x2   :  { %s25_s25 = sshll.u32 %s927_s24, 4  ;;  %p880_p0 = scmp.ne.s32.totalorder %s1027_s3, %s879_s28  ;;  %s26_s25 = int_to_ptr.vmem [resolvable:$true] %s25_s25 }
   0x3   :  { %p883_p1 = scmp.lt.u32.totalorder %s879_s28, %s1027_s3 }
   0x5   :  { %p885_p2 = pnand %p883_p1, %p880_p0 }
   0x7   :  { %888 = shalt.err (!%p885_p2)
}
   0x8   :  { %s889_s10 = scalar_lea.vmem %s26_s25, 4096  ;;  %p894_p4 = scmp.lt.s32.totalorder %s26_s25, %s26_s25 }
   0x9   :  { %p890_p3 = scmp.ne.s32.totalorder %s26_s25, %s889_s10  ;;  %p895_p5 = scmp.lt.s32.totalorder %s889_s10, %s889_s10 }
   0xb   :  { %p896_p6 = por %p895_p5, %p894_p4 }
   0xd   :  { %p897_p7 = pnand %p896_p6, %p890_p3 }
   0xf   :  { %900 = shalt.err (!%p897_p7)
}
  0x10   :  { %s928_s11 = smov 128   ;;  %s929_s12 = smov 8  }
  0x11   :  { %31 = dma.hbm_to_vmem [thread:$0]  %s1027_s3, 4096, %s26_s25, [#allocation3], %s928_s11, %s928_s11, %s929_s12  }
  0x12   :  { %s930_s15 = smov [#allocation4]   ;;  %s901_s19 = scalar_lea.hbm %s1029_s5, 2048 }
  0x13   :  { %s39_s16 = sshll.u32 %s930_s15, 4  ;;  %p902_p8 = scmp.ne.s32.totalorder %s1029_s5, %s901_s19  ;;  %s40_s16 = int_to_ptr.vmem [resolvable:$true] %s39_s16 }
  0x14   :  { %p905_p9 = scmp.lt.u32.totalorder %s901_s19, %s1029_s5 }
  0x16   :  { %p907_p10 = pnand %p905_p9, %p902_p8 }
  0x18   :  { %910 = shalt.err (!%p907_p10)
}
  0x19   :  { %s911_s24 = scalar_lea.vmem %s40_s16, 2048  ;;  %p916_p12 = scmp.lt.s32.totalorder %s40_s16, %s40_s16 }
  0x1a   :  { %p912_p11 = scmp.ne.s32.totalorder %s40_s16, %s911_s24  ;;  %p917_p13 = scmp.lt.s32.totalorder %s911_s24, %s911_s24 }
  0x1c   :  { %p918_p0 = por %p917_p13, %p916_p12 }
  0x1e   :  { %p919_p1 = pnand %p918_p0, %p912_p11 }
  0x20   :  { %922 = shalt.err (!%p919_p1)
}
  0x21   :  { %s931_s3 = smov 64   ;;  %s932_s25 = smov 4  }
  0x22   :  { %45 = dma.hbm_to_vmem [thread:$0]  %s1029_s5, 2048, %s40_s16, [#allocation5], %s931_s3, %s931_s3, %s932_s25  }
  0x23   :  { %923 = dma.done.wait [#allocation3], 4096  }
  0x24   :  { %924 = vsyncadd [#allocation3], 4294963200 }
  0x25   :  { %925 = dma.done.wait [#allocation5], 2048  }
  0x26   :  { %926 = vsyncadd [#allocation5], 4294965248  ;;  %v933_v0 = vmov 0   ;;  %v59_v1 = vld [vmem:[%s1025_s1] sm:$0xff]  ;;  %vm94_vm0 = vcmask 1043456   ;;  %vm87_vm1 = vcmask 64512   ;;  %v62_v50 = vlaneseq }
  0x27   :  { %133 = vmatprep.mubr.bf16.mxu0 %v933_v0  ;;  %v692_v2 = vcombine.high %v59_v1, %v59_v1  ;;  %v691_v3 = vcombine.low %v59_v1, %v59_v1  ;;  %v801_v4 = vld [vmem:[%s1024_s0] sm:$0xff]   ;;  %v806_v8 = vld [vmem:[#allocation2 + $0x14] ss:$8 sps:$4 sm:$0xff]   ;;  %v808_v9 = vld [vmem:[#allocation2 + $0x10] ss:$8 sps:$4 sm:$0xff]  }
  0x28   :  { %v803_v6 = vld [vmem:[#allocation2 + $0x4] ss:$8 sps:$4 sm:$0xff]   ;;  %v805_v7 = vld [vmem:[#allocation2] ss:$8 sps:$4 sm:$0xff]   ;;  %v812_v13 = vld [vmem:[#allocation2 + $0x34] ss:$8 sps:$4 sm:$0xff]  }
  0x29   :  { %693 = vmatprep.subr.msk.bf16.mxu0 %vm94_vm0, %v692_v2  ;;  %v96_v5 = vsel %vm94_vm0, %v691_v3, 0  ;;  %370 = vmatprep.subr.bf16.mxu1 %v803_v6  ;;  %v809_v10 = vld [vmem:[#allocation2 + $0x24] ss:$8 sps:$4 sm:$0xff]   ;;  %v811_v11 = vld [vmem:[#allocation2 + $0x20] ss:$8 sps:$4 sm:$0xff]   ;;  %v855_v43 = vld [vmem:[#allocation4 + $0x50] sm:$0xff]  }
  0x2a   :  { %102 = vmatpush1.bf16.msra.mxu0 %v96_v5  ;;  %371 = vmatpush1.bf16.msra.mxu1 %v805_v7  ;;  %v802_v12 = vld [vmem:[%s1024_s0 + $0x8] sm:$0xff]   ;;  %v814_v14 = vld [vmem:[#allocation2 + $0x30] ss:$8 sps:$4 sm:$0xff]   ;;  %v818_v17 = vld [vmem:[#allocation2 + $0x54] ss:$8 sps:$4 sm:$0xff]   ;;  %v63_v51 = vshrl.u32 %v62_v50, 7 }
  0x2b   :  { %372 = vmatprep.subr.bf16.mxu1 %v806_v8  ;;  %v815_v15 = vld [vmem:[#allocation2 + $0x44] ss:$8 sps:$4 sm:$0xff]   ;;  %v817_v16 = vld [vmem:[#allocation2 + $0x40] ss:$8 sps:$4 sm:$0xff]   ;;  %v820_v18 = vld [vmem:[#allocation2 + $0x50] ss:$8 sps:$4 sm:$0xff]  }
  0x2c   :  { %v821_v19 = vld [vmem:[#allocation2 + $0x64] ss:$8 sps:$4 sm:$0xff]   ;;  %v823_v20 = vld [vmem:[#allocation2 + $0x60] ss:$8 sps:$4 sm:$0xff]   ;;  %v824_v21 = vld [vmem:[#allocation2 + $0x74] ss:$8 sps:$4 sm:$0xff]  }
  0x2d   :  { %694 = vmatmul.mubr.msk.bf16.vlgmr.msra.gmra.mrb[0].mxu0 %vm87_vm1, %v801_v4  ;;  %v826_v22 = vld [vmem:[#allocation2 + $0x70] ss:$8 sps:$4 sm:$0xff]   ;;  %v827_v23 = vld [vmem:[#allocation2 + $0x84] ss:$8 sps:$4 sm:$0xff]   ;;  %v829_v24 = vld [vmem:[#allocation2 + $0x80] ss:$8 sps:$4 sm:$0xff]  }
  0x2e   :  { %143 = vmatprep.mubr.bf16.mxu0 %v933_v0  ;;  %373 = vmatpush1.bf16.msra.mxu1 %v808_v9  ;;  %v830_v25 = vld [vmem:[#allocation2 + $0x94] ss:$8 sps:$4 sm:$0xff]   ;;  %v832_v26 = vld [vmem:[#allocation2 + $0x90] ss:$8 sps:$4 sm:$0xff]   ;;  %v833_v27 = vld [vmem:[#allocation2 + $0xa4] ss:$8 sps:$4 sm:$0xff]  }
  0x2f   :  { %374 = vmatprep.subr.bf16.mxu1 %v809_v10  ;;  %v835_v28 = vld [vmem:[#allocation2 + $0xa0] ss:$8 sps:$4 sm:$0xff]   ;;  %v836_v29 = vld [vmem:[#allocation2 + $0xb4] ss:$8 sps:$4 sm:$0xff]   ;;  %v838_v30 = vld [vmem:[#allocation2 + $0xb0] ss:$8 sps:$4 sm:$0xff]  }
  0x30   :  { %v839_v31 = vld [vmem:[#allocation2 + $0xc4] ss:$8 sps:$4 sm:$0xff]   ;;  %v841_v32 = vld [vmem:[#allocation2 + $0xc0] ss:$8 sps:$4 sm:$0xff]   ;;  %v842_v33 = vld [vmem:[#allocation2 + $0xd4] ss:$8 sps:$4 sm:$0xff]  }
  0x31   :  { %v844_v34 = vld [vmem:[#allocation2 + $0xd0] ss:$8 sps:$4 sm:$0xff]   ;;  %v845_v35 = vld [vmem:[#allocation2 + $0xe4] ss:$8 sps:$4 sm:$0xff]   ;;  %v847_v36 = vld [vmem:[#allocation2 + $0xe0] ss:$8 sps:$4 sm:$0xff]  }
  0x32   :  { %375 = vmatpush1.bf16.msra.mxu1 %v811_v11  ;;  %v848_v37 = vld [vmem:[#allocation2 + $0xf4] ss:$8 sps:$4 sm:$0xff]   ;;  %v850_v38 = vld [vmem:[#allocation2 + $0xf0] ss:$8 sps:$4 sm:$0xff]   ;;  %v851_v39 = vld [vmem:[#allocation4 + $0x40] sm:$0xff]   ;;  %v64_v52 = vsub.s32 0, %v63_v51 }
  0x33   :  { %376 = vmatprep.subr.bf16.mxu1 %v812_v13  ;;  %v852_v40 = vld [vmem:[#allocation4] sm:$0xff]   ;;  %v853_v41 = vld [vmem:[#allocation4 + $0x48] sm:$0xff]   ;;  %764 = vmatprep.subr.bf16.mxu0 %v851_v39  ;;  %v856_v44 = vld [vmem:[#allocation4 + $0x10] sm:$0xff]   ;;  %v68_v54 = vsub.s32 1, %v63_v51 }
  0x34   :  { %765 = vmatpush3.bf16.msra.mxu0 %v852_v40  ;;  %v854_v42 = vld [vmem:[#allocation4 + $0x8] sm:$0xff]   ;;  %v857_v45 = vld [vmem:[#allocation4 + $0x58] sm:$0xff]   ;;  %v859_v47 = vld [vmem:[#allocation4 + $0x60] sm:$0xff]  }
  0x35   :  { %695 = vmatmul.mubr.msk.bf16.gmra.mrb[4].mxu0 %vm87_vm1, %v802_v12  ;;  %766 = vmatprep.subr.bf16.mxu0 %v853_v41  ;;  %v858_v46 = vld [vmem:[#allocation4 + $0x18] sm:$0xff]   ;;  %v860_v48 = vld [vmem:[#allocation4 + $0x20] sm:$0xff]   ;;  %v861_v49 = vld [vmem:[#allocation4 + $0x68] sm:$0xff]  }
  0x36   :  { %377 = vmatpush1.bf16.msra.mxu1 %v814_v14  ;;  %v60_v53 = vld [vmem:[%s1026_s2] sm:$0x3] }
  0x37   :  { %378 = vmatprep.subr.bf16.mxu1 %v815_v15  ;;  %v65_v55 = vrot.slane %v60_v53, %v64_v52  ;;  %v69_v56 = vrot.slane %v60_v53, %v68_v54 }
  0x38   :  { %767 = vmatpush3.bf16.msra.mxu0 %v854_v42 }
  0x39   :  { %768 = vmatprep.subr.bf16.mxu0 %v855_v43 }
  0x3a   :  { %379 = vmatpush1.bf16.msra.mxu1 %v817_v16 }
  0x3b   :  { %380 = vmatprep.subr.bf16.mxu1 %v818_v17 }
  0x3c   :  { %769 = vmatpush3.bf16.msra.mxu0 %v856_v44 }
  0x3d   :  { %770 = vmatprep.subr.bf16.mxu0 %v857_v45 }
  0x3e   :  { %381 = vmatpush1.bf16.msra.mxu1 %v820_v18 }
  0x3f   :  { %382 = vmatprep.subr.bf16.mxu1 %v821_v19 }
  0x40   :  { %771 = vmatpush3.bf16.msra.mxu0 %v858_v46 }
  0x41   :  { %772 = vmatprep.subr.bf16.mxu0 %v859_v47 }
  0x42   :  { %383 = vmatpush1.bf16.msra.mxu1 %v823_v20 }
  0x43   :  { %384 = vmatprep.subr.bf16.mxu1 %v824_v21  ;;  %v862_v21 = vld [vmem:[#allocation4 + $0x28] sm:$0xff]  }
  0x44   :  { %773 = vmatpush3.bf16.msra.mxu0 %v860_v48 }
  0x45   :  { %774 = vmatprep.subr.bf16.mxu0 %v861_v49 }
  0x46   :  { %385 = vmatpush1.bf16.msra.mxu1 %v826_v22  ;;  %v863_v22 = vld [vmem:[#allocation4 + $0x70] sm:$0xff]  }
  0x47   :  { %386 = vmatprep.subr.bf16.mxu1 %v827_v23  ;;  %v864_v23 = vld [vmem:[#allocation4 + $0x30] sm:$0xff]  }
  0x48   :  { %775 = vmatpush3.bf16.msra.mxu0 %v862_v21 }
  0x49   :  { %776 = vmatprep.subr.bf16.mxu0 %v863_v22 }
  0x4a   :  { %387 = vmatpush1.bf16.msra.mxu1 %v829_v24  ;;  %v865_v24 = vld [vmem:[#allocation4 + $0x78] sm:$0xff]  }
  0x4b   :  { %388 = vmatprep.subr.bf16.mxu1 %v830_v25  ;;  %v866_v25 = vld [vmem:[#allocation4 + $0x38] sm:$0xff]  }
  0x4c   :  { %777 = vmatpush3.bf16.msra.mxu0 %v864_v23 }
  0x4d   :  { %778 = vmatprep.subr.bf16.mxu0 %v865_v24 }
  0x4e   :  { %389 = vmatpush1.bf16.msra.mxu1 %v832_v26  ;;  %v198_v26 = vld [vmem:[%s1028_s4] sm:$0x3] }
  0x4f   :  { %390 = vmatprep.subr.bf16.mxu1 %v833_v27  ;;  %v203_v27 = vrot.slane %v198_v26, %v64_v52 }
  0x50   :  { %779 = vmatpush3.bf16.msra.mxu0 %v866_v25 }
  0x52   :  { %391 = vmatpush1.bf16.msra.mxu1 %v835_v28  ;;  %v207_v28 = vrot.slane %v198_v26, %v68_v54 }
  0x53   :  { %392 = vmatprep.subr.bf16.mxu1 %v836_v29 }
  0x56   :  { %393 = vmatpush1.bf16.msra.mxu1 %v838_v30 }
  0x57   :  { %394 = vmatprep.subr.bf16.mxu1 %v839_v31 }
  0x5a   :  { %395 = vmatpush1.bf16.msra.mxu1 %v841_v32 }
  0x5b   :  { %396 = vmatprep.subr.bf16.mxu1 %v842_v33 }
  0x5e   :  { %397 = vmatpush1.bf16.msra.mxu1 %v844_v34 }
  0x5f   :  { %398 = vmatprep.subr.bf16.mxu1 %v845_v35 }
  0x62   :  { %399 = vmatpush1.bf16.msra.mxu1 %v847_v36 }
  0x63   :  { %400 = vmatprep.subr.bf16.mxu1 %v848_v37 }
  0x66   :  { %401 = vmatpush1.bf16.msra.mxu1 %v850_v38 }
 0x100   :  { %v135_v57 = vpop.f32.mrb[0].mxu0 }
 0x101   :  { %v136_v58 = vadd.f32 %v135_v57, %v65_v55  ;;  %v137_v59 = vpop.f32.mrb[1].mxu0 }
 0x102   :  { %v138_v60 = vadd.f32 %v137_v59, %v69_v56  ;;  %v139_v61 = vpop.f32.mrb[2].mxu0  ;;  %v728_v59 = vld [vmem:[%s1030_s6] ss:$0 sm:$0xff] }
 0x103   :  { %v140_v62 = vadd.f32 %v139_v61, %v65_v55  ;;  %v141_v63 = vpop.f32.mrb[3].mxu0  ;;  %v154_v1 = vmax.f32 %v136_v58, 0.0 }
 0x104   :  { %v142_v0 = vadd.f32 %v141_v63, %v69_v56  ;;  %v155_v3 = vmax.f32 %v138_v60, 0.0 }
 0x105   :  { %v156_v2 = vmax.f32 %v140_v62, 0.0 }
 0x106   :  { %v157_v4 = vmax.f32 %v142_v0, 0.0 }
 0x107   :  { %v162_v5 = vpack.c.bf16 %v156_v2, %v154_v1 }
 0x108   :  { %v145_v6 = vpop.f32.mrb[4].mxu0  ;;  %v163_v7 = vpack.c.bf16 %v157_v4, %v155_v3 }
 0x109   :  { %v146_v8 = vadd.f32 %v145_v6, %v65_v55  ;;  %v147_v9 = vpop.f32.mrb[5].mxu0 }
 0x10a   :  { %v148_v10 = vadd.f32 %v147_v9, %v69_v56  ;;  %v149_v11 = vpop.f32.mrb[6].mxu0  ;;  %402 = vmatprep.mubr.bf16.mxu1 %v163_v7 }
 0x10b   :  { %v150_v12 = vadd.f32 %v149_v11, %v65_v55  ;;  %v151_v13 = vpop.f32.mrb[7].mxu0  ;;  %403 = vmatmul.mubr.bf16.vlgmr.msra.gmra.mrb[0].mxu1 %v162_v5  ;;  %v158_v15 = vmax.f32 %v146_v8, 0.0 }
 0x10c   :  { %v152_v14 = vadd.f32 %v151_v13, %v69_v56  ;;  %v159_v17 = vmax.f32 %v148_v10, 0.0 }
 0x10d   :  { %v160_v16 = vmax.f32 %v150_v12, 0.0 }
 0x10e   :  { %v161_v18 = vmax.f32 %v152_v14, 0.0 }
 0x10f   :  { %v164_v19 = vpack.c.bf16 %v160_v16, %v158_v15 }
 0x110   :  { %v165_v20 = vpack.c.bf16 %v161_v18, %v159_v17 }
 0x112   :  { %412 = vmatprep.mubr.bf16.mxu1 %v165_v20 }
 0x113   :  { %413 = vmatmul.mubr.bf16.gmra.mrb[4].mxu1 %v164_v19 }
 0x1de   :  { %v404_v29 = vpop.f32.mrb[0].mxu1 }
 0x1df   :  { %v405_v30 = vadd.f32 %v404_v29, %v203_v27  ;;  %v406_v31 = vpop.f32.mrb[1].mxu1 }
 0x1e0   :  { %v407_v32 = vadd.f32 %v406_v31, %v207_v28  ;;  %v408_v33 = vpop.f32.mrb[2].mxu1 }
 0x1e1   :  { %v409_v34 = vadd.f32 %v408_v33, %v203_v27  ;;  %v410_v35 = vpop.f32.mrb[3].mxu1  ;;  %v423_v37 = vmax.f32 %v405_v30, 0.0 }
 0x1e2   :  { %v411_v36 = vadd.f32 %v410_v35, %v207_v28  ;;  %v424_v39 = vmax.f32 %v407_v32, 0.0 }
 0x1e3   :  { %v425_v38 = vmax.f32 %v409_v34, 0.0 }
 0x1e4   :  { %v426_v40 = vmax.f32 %v411_v36, 0.0 }
 0x1e5   :  { %v431_v41 = vpack.c.bf16 %v425_v38, %v423_v37 }
 0x1e6   :  { %v432_v42 = vpack.c.bf16 %v426_v40, %v424_v39  ;;  %v414_v43 = vpop.f32.mrb[4].mxu1 }
 0x1e7   :  { %v415_v44 = vadd.f32 %v414_v43, %v203_v27  ;;  %v416_v45 = vpop.f32.mrb[5].mxu1 }
 0x1e8   :  { %v417_v46 = vadd.f32 %v416_v45, %v207_v28  ;;  %v418_v47 = vpop.f32.mrb[6].mxu1  ;;  %602 = vmatprep.mubr.bf16.mxu0 %v432_v42 }
 0x1e9   :  { %v419_v48 = vadd.f32 %v418_v47, %v203_v27  ;;  %v420_v49 = vpop.f32.mrb[7].mxu1  ;;  %603 = vmatmul.mubr.bf16.vlgmr.msra.gmra.mrb[8].mxu0 %v431_v41  ;;  %v427_v51 = vmax.f32 %v415_v44, 0.0 }
 0x1ea   :  { %v421_v50 = vadd.f32 %v420_v49, %v207_v28  ;;  %v428_v53 = vmax.f32 %v417_v46, 0.0 }
 0x1eb   :  { %v429_v52 = vmax.f32 %v419_v48, 0.0 }
 0x1ec   :  { %v430_v54 = vmax.f32 %v421_v50, 0.0 }
 0x1ed   :  { %v433_v55 = vpack.c.bf16 %v429_v52, %v427_v51 }
 0x1ee   :  { %v434_v56 = vpack.c.bf16 %v430_v54, %v428_v53 }
 0x1f0   :  { %610 = vmatprep.mubr.bf16.mxu0 %v434_v56 }
 0x1f1   :  { %611 = vmatmul.mubr.bf16.gmra.mrb[12].mxu0 %v433_v55 }
 0x2bc   :  { %v780_v57 = vpop.f32.mrb[8].mxu0 }
 0x2bd   :  { %v781_v58 = vpop.f32.mrb[9].mxu0 }
 0x2be   :  { %v782_v60 = vadd.f32 %v781_v58, %v780_v57  ;;  %v783_v61 = vpop.f32.mrb[10].mxu0 }
 0x2bf   :  { %v784_v62 = vpop.f32.mrb[11].mxu0 }
 0x2c0   :  { %v785_v63 = vadd.f32 %v784_v62, %v783_v61  ;;  %v605_v0 = vadd.f32 %v782_v60, %v728_v59 }
 0x2c2   :  { %619 = vmax.xlane.f32.xlu0 %v605_v0  ;;  %v608_v2 = vadd.f32 %v785_v63, %v728_v59 }
 0x2c4   :  { %v786_v1 = vpop.f32.mrb[12].mxu0 }
 0x2c5   :  { %v787_v3 = vpop.f32.mrb[13].mxu0 }
 0x2c6   :  { %v788_v4 = vadd.f32 %v787_v3, %v786_v1  ;;  %v789_v5 = vpop.f32.mrb[14].mxu0  ;;  %621 = vmax.xlane.f32.xlu0 %v608_v2 }
 0x2c7   :  { %v790_v6 = vpop.f32.mrb[15].mxu0 }
 0x2c8   :  { %v791_v7 = vadd.f32 %v790_v6, %v789_v5  ;;  %v613_v8 = vadd.f32 %v788_v4, %v728_v59 }
 0x2ca   :  { %623 = vmax.xlane.f32.xlu1 %v613_v8  ;;  %v616_v9 = vadd.f32 %v791_v7, %v728_v59 }
 0x2ce   :  { %625 = vmax.xlane.f32.xlu1 %v616_v9 }
 0x34f   :  { %v620_v10 = vpop.xlane.xlu0 %619 }
 0x350   :  { %v627_v12 = vsub.f32 %v605_v0, %v620_v10 }
 0x353   :  { %v622_v11 = vpop.xlane.xlu0 %621 }
 0x354   :  { %v628_v13 = vsub.f32 %v608_v2, %v622_v11 }
 0x356   :  { %v631_v14 = vpack.c.bf16 %v628_v13, %v627_v12 }
 0x357   :  { %v624_v15 = vpop.xlane.xlu1 %623 }
 0x358   :  { %v634_v16 = vmul.bf16 1069105081, %v631_v14  ;;  %v629_v18 = vsub.f32 %v613_v8, %v624_v15 }
 0x35a   :  { %867 = vpow.bf16 %v634_v16 }
 0x35b   :  { %v626_v17 = vpop.xlane.xlu1 %625 }
 0x35c   :  { %v630_v19 = vsub.f32 %v616_v9, %v626_v17 }
 0x35e   :  { %v632_v20 = vpack.c.bf16 %v630_v19, %v629_v18 }
 0x360   :  { %v637_v21 = vmul.bf16 1069105081, %v632_v20 }
 0x362   :  { %869 = vpow.bf16 %v637_v21 }
 0x365   :  { %v868_v22 = vpop.eup %867 }
 0x366   :  { %v640_v23 = vunpack.c.h.bf16 %v868_v22  ;;  %v639_v24 = vunpack.c.l.bf16 %v868_v22 }
 0x368   :  { %645 = vadd.xlane.f32.xlu1 %v640_v23  ;;  %643 = vadd.xlane.f32.xlu0 %v639_v24 }
 0x36d   :  { %v870_v25 = vpop.eup %869 }
 0x36e   :  { %v642_v26 = vunpack.c.h.bf16 %v870_v25  ;;  %v641_v27 = vunpack.c.l.bf16 %v870_v25 }
 0x370   :  { %649 = vadd.xlane.f32.xlu1 %v642_v26  ;;  %647 = vadd.xlane.f32.xlu0 %v641_v27 }
 0x3f5   :  { %v646_v28 = vpop.xlane.xlu1 %645  ;;  %v644_v29 = vpop.xlane.xlu0 %643 }
 0x3f6   :  { %871 = vlog2.f32 %v646_v28 }
 0x3f7   :  { %873 = vlog2.f32 %v644_v29 }
 0x3fd   :  { %v650_v30 = vpop.xlane.xlu1 %649  ;;  %v648_v31 = vpop.xlane.xlu0 %647 }
 0x3fe   :  { %875 = vlog2.f32 %v650_v30 }
 0x3ff   :  { %877 = vlog2.f32 %v648_v31 }
 0x400   :  { %v872_v32 = vpop.eup %871 }
 0x401   :  { %v874_v33 = vpop.eup %873  ;;  %v654_v34 = vmul.f32 0.6931472, %v872_v32 }
 0x402   :  { %v652_v35 = vmul.f32 0.6931472, %v874_v33 }
 0x403   :  { %v660_v36 = vsub.f32 %v628_v13, %v654_v34 }
 0x404   :  { %v659_v37 = vsub.f32 %v627_v12, %v652_v35 }
 0x406   :  { %v756_v38 = vpack.c.bf16 %v660_v36, %v659_v37 }
 0x408   :  { %v876_v39 = vpop.eup %875  ;;  %757 = vst [vmem:[%s1031_s7] sm:$0xff] %v756_v38  }
 0x409   :  { %v878_v40 = vpop.eup %877  ;;  %v658_v41 = vmul.f32 0.6931472, %v876_v39 }
 0x40a   :  { %v656_v42 = vmul.f32 0.6931472, %v878_v40 }
 0x40b   :  { %v662_v43 = vsub.f32 %v630_v19, %v658_v41 }
 0x40c   :  { %v661_v44 = vsub.f32 %v629_v18, %v656_v42 }
 0x40e   :  { %v761_v45 = vpack.c.bf16 %v662_v43, %v661_v44 }
 0x410   :  { %763 = vst [vmem:[%s1031_s7 + $0x8] sm:$0xff] %v761_v45  }
 0x411   :  { %687 = vsyncpa [#allocation3], 1 }
 0x412   :  { %688 = vsyncpa [#allocation5], 1 }

</bundles_post_ra>
